<compile_context>
chip_gen: v7x
topology: tpu7x:2x2x1
jax: 0.10.0
libtpu: 0.0.40
codegen_flags: <defaults>
</compile_context>

<pallas_src>
import jax
import jax.numpy as jnp
from jax.experimental import pallas as pl
from jax.experimental.pallas import tpu as pltpu

LANE = 128          # TPU lane width: pad class dim to this for lane-dense stores
_TILE_TARGET = 256  # MXU-native tile target (v6e/v7x 256; also a multiple of v5e's 128)


def _tile(n, target=_TILE_TARGET):
    """Largest MXU-friendly tile: `target` if it divides n, else full extent."""
    return target if n % target == 0 else n


# ---------------------------------------------------------------------------
# Kernel 1: feature projection  z0 = X @ W_pad  (project BEFORE propagation).
# ---------------------------------------------------------------------------
def project_kernel(x_ref, w_ref, o_ref):
    o_ref[...] = jnp.dot(
        x_ref[...], w_ref[...], preferred_element_type=jnp.float32
    ).astype(o_ref.dtype)


def _project(x_bf16, w_bf16):
    n = x_bf16.shape[0]
    cp = w_bf16.shape[1]
    vmem = pl.BlockSpec(memory_space=pltpu.MemorySpace.VMEM)
    # Small (N,F)@(F,C_pad) op; full-VMEM residency is fine (tile rows if N grows).
    return pl.pallas_call(
        project_kernel,
        out_shape=jax.ShapeDtypeStruct((n, cp), jnp.bfloat16),
        in_specs=[vmem, vmem],
        out_specs=vmem,
    )(x_bf16, w_bf16)


# ---------------------------------------------------------------------------
# Kernel 2: one propagation step h_out = A_hat @ h_in, row/K tiled.
# The last call fuses bias + ReLU + (eval) dropout + log_softmax epilogue.
# ---------------------------------------------------------------------------
def make_propagate_kernel(finalize, num_classes):
    def kernel(a_ref, h_ref, b_ref, o_ref, acc_ref):
        @pl.when(pl.program_id(1) == 0)
        def _():
            acc_ref[...] = jnp.zeros_like(acc_ref)

        # bf16 x bf16 operands, f32 accumulation on the MXU.
        acc_ref[...] += jnp.dot(
            a_ref[...], h_ref[...], preferred_element_type=jnp.float32
        )

        @pl.when(pl.program_id(1) == pl.num_programs(1) - 1)
        def _():
            z = acc_ref[...]
            if finalize:
                z = z + b_ref[...]                  # deferred SGConv bias
                z = jnp.maximum(z, 0.0)             # ReLU
                # TODO(synk): dropout is identity here (eval semantics); training-mode
                # random masking not implemented.
                col = jax.lax.broadcasted_iota(jnp.int32, z.shape, 1)
                z = jnp.where(col < num_classes, z, -jnp.inf)  # mask lane padding
                m = jnp.max(z, axis=1, keepdims=True)
                s = z - m
                lse = jnp.log(jnp.sum(jnp.exp(s), axis=1, keepdims=True))
                z = s - lse                          # log_softmax over real classes
            o_ref[...] = z.astype(o_ref.dtype)

    return kernel


def _propagate(a_bf16, h_bf16, b_pad, *, finalize, num_classes):
    n = a_bf16.shape[0]
    cp = h_bf16.shape[1]
    tm = _tile(n)  # node-row tile  ("parallel": shards across v7x's 2 TCs)
    tk = _tile(n)  # reduction tile ("arbitrary", last grid axis)
    out_dtype = jnp.float32 if finalize else jnp.bfloat16
    return pl.pallas_call(
        make_propagate_kernel(finalize, num_classes),
        out_shape=jax.ShapeDtypeStruct((n, cp), out_dtype),
        grid_spec=pltpu.PrefetchScalarGridSpec(
            num_scalar_prefetch=0,
            grid=(n // tm, n // tk),
            in_specs=[
                pl.BlockSpec((tm, tk), lambda i, k: (i, k)),  # A_hat tile
                pl.BlockSpec((tk, cp), lambda i, k: (k, 0)),  # propagated features
                pl.BlockSpec((1, cp), lambda i, k: (0, 0)),   # padded bias
            ],
            out_specs=pl.BlockSpec((tm, cp), lambda i, k: (i, 0)),
            scratch_shapes=[pltpu.VMEM((tm, cp), jnp.float32)],
        ),
        compiler_params=pltpu.CompilerParams(
            dimension_semantics=("parallel", "arbitrary")
        ),
    )(a_bf16, h_bf16, b_pad)


def sgc_net_forward(a_hat, x, w, b):
    """SGC_Net forward.

    a_hat: (N,N) f32 sym-normalized adjacency, x: (N,F) f32 features,
    w: (F,C) f32 SGConv weight (transposed vs torch), b: (C,) f32 bias.
    Returns (N,C) f32 log-probabilities.
    """
    n, f = x.shape
    c = w.shape[1]
    cp = ((c + LANE - 1) // LANE) * LANE  # pad classes to lane width (>=128)

    # bf16 MXU operands; zero-padded class dim keeps every tile lane-dense.
    a_bf16 = a_hat.astype(jnp.bfloat16)
    x_bf16 = x.astype(jnp.bfloat16)
    w_pad = jnp.zeros((f, cp), jnp.float32).at[:, :c].set(w).astype(jnp.bfloat16)
    b_pad = jnp.zeros((1, cp), jnp.float32).at[0, :c].set(b)

    # Reassociated SGConv k=3:  A^3 (X W) == (A^3 X) W, bias added at the end.
    h = _project(x_bf16, w_pad)                                           # (N,CP) bf16
    h = _propagate(a_bf16, h, b_pad, finalize=False, num_classes=c)       # A @ h
    h = _propagate(a_bf16, h, b_pad, finalize=False, num_classes=c)       # A @ h
    out_pad = _propagate(a_bf16, h, b_pad, finalize=True, num_classes=c)  # + epilogue
    return out_pad[:, :c]


def build_normalized_adjacency(key, n):
    # Random undirected graph + self-loops, symmetric normalization.
    a = jax.random.bernoulli(key, p=0.1, shape=(n, n)).astype(jnp.float32)
    a = jnp.maximum(a, a.T)
    a = jnp.maximum(a, jnp.eye(n, dtype=jnp.float32))  # self-loops (no zero degree)
    deg = jnp.sum(a, axis=1)
    d_inv_sqrt = 1.0 / jnp.sqrt(deg)
    return d_inv_sqrt[:, None] * a * d_inv_sqrt[None, :]


if __name__ == "__main__":
    # Small shapes implied by the module: N nodes, F input features, C classes.
    N, F_IN, C = 64, 32, 8

    key = jax.random.PRNGKey(0)
    k_adj, k_x, k_w, k_b = jax.random.split(key, 4)

    a_hat = build_normalized_adjacency(k_adj, N)
    x = jax.random.normal(k_x, (N, F_IN), dtype=jnp.float32)
    # Deterministic SGConv parameters (linear: num_features -> num_classes).
    w = jax.random.normal(k_w, (F_IN, C), dtype=jnp.float32) * 0.1
    b = jax.random.normal(k_b, (C,), dtype=jnp.float32) * 0.01

    fwd = jax.jit(sgc_net_forward)
    out = fwd(a_hat, x, w, b)
    jax.block_until_ready(out)

    assert out.shape == (N, C)
    # log_softmax rows should sum (in prob space) to ~1.
    assert jnp.allclose(jnp.sum(jnp.exp(out), axis=1), 1.0, atol=1e-4)

    # Reference (original op order, f32): tolerance covers bf16 operands +
    # reassociated rounding order.
    ref_h = x
    for _ in range(3):
        ref_h = a_hat @ ref_h
    ref = jax.nn.log_softmax(jnp.maximum(ref_h @ w + b, 0.0), axis=1)
    assert jnp.allclose(out, ref, atol=0.1), float(jnp.max(jnp.abs(out - ref)))

    print("KERNEL_OK")
</pallas_src>

<mosaic_0001>
module attributes {stable_mosaic.version = 11 : i64} {
  func.func @project_kernel(%arg0: memref<64x32xbf16, #tpu.memory_space<vmem>>, %arg1: memref<32x128xbf16, #tpu.memory_space<vmem>>, %arg2: memref<64x128xbf16, #tpu.memory_space<vmem>>) attributes {dimension_semantics = [], scalar_prefetch = 0 : i64, scratch_operands = 0 : i64, tpu.core_type = #tpu.core_type<tc>} {
    %c0 = arith.constant 0 : index
    %c0_0 = arith.constant 0 : index
    %0 = vector.load %arg0[%c0, %c0_0] : memref<64x32xbf16, #tpu.memory_space<vmem>>, vector<64x32xbf16>
    %c0_1 = arith.constant 0 : index
    %c0_2 = arith.constant 0 : index
    %1 = vector.load %arg1[%c0_1, %c0_2] : memref<32x128xbf16, #tpu.memory_space<vmem>>, vector<32x128xbf16>
    %cst = arith.constant dense<0.000000e+00> : vector<64x128xf32>
    %2 = tpu.matmul %0, %1, %cst {dimension_numbers = #tpu.dot_dimension_numbers<[1], [0], [0], [1], [0, 0, 1, 1], [], []>} : vector<64x32xbf16>, vector<32x128xbf16>, vector<64x128xf32> -> vector<64x128xf32>
    %3 = arith.truncf %2 : vector<64x128xf32> to vector<64x128xbf16>
    %c0_3 = arith.constant 0 : index
    %c0_4 = arith.constant 0 : index
    %4 = vector.load %arg2[%c0_3, %c0_4] : memref<64x128xbf16, #tpu.memory_space<vmem>>, vector<64x128xbf16>
    tpu.vector_store %arg2[%c0_3, %c0_4], %3 {strides = array<i32>} : memref<64x128xbf16, #tpu.memory_space<vmem>>, vector<64x128xbf16>,
    return
  }
}

module attributes {stable_mosaic.version = 11 : i64} {
  func.func @kernel(%arg0: i32, %arg1: i32, %arg2: memref<64x64xbf16, #tpu.memory_space<vmem>>, %arg3: memref<64x128xbf16, #tpu.memory_space<vmem>>, %arg4: memref<1x128xf32, #tpu.memory_space<vmem>>, %arg5: memref<64x128xbf16, #tpu.memory_space<vmem>>, %arg6: memref<64x128xf32, #tpu.memory_space<vmem>>) attributes {dimension_semantics = [#tpu.dimension_semantics<parallel>, #tpu.dimension_semantics<arbitrary>], iteration_bounds = array<i64: 1, 1>, scalar_prefetch = 0 : i64, scratch_operands = 1 : i64, tpu.core_type = #tpu.core_type<tc>, window_params = [{transform_indices = @transform_0, window_bounds = array<i64: 64, 64>}, {transform_indices = @transform_1, window_bounds = array<i64: 64, 128>}, {pipeline_mode = #tpu.pipeline_mode<synchronous>, transform_indices = @transform_2, window_bounds = array<i64: 1, 128>}, {transform_indices = @transform_3, window_bounds = array<i64: 64, 128>}]} {
    %c0_i32 = arith.constant 0 : i32
    %0 = arith.cmpi eq, %arg1, %c0_i32 : i32
    %1 = arith.extui %0 : i1 to i32
    %c0_i32_0 = arith.constant 0 : i32
    %2 = arith.cmpi ne, %1, %c0_i32_0 : i32
    scf.if %2 {
      %cst_10 = arith.constant 0.000000e+00 : f32
      %12 = vector.broadcast %cst_10 : f32 to vector<64x128xf32>
      %c0_11 = arith.constant 0 : index
      %c0_12 = arith.constant 0 : index
      %13 = vector.load %arg6[%c0_11, %c0_12] : memref<64x128xf32, #tpu.memory_space<vmem>>, vector<64x128xf32>
      tpu.vector_store %arg6[%c0_11, %c0_12], %12 {strides = array<i32>} : memref<64x128xf32, #tpu.memory_space<vmem>>, vector<64x128xf32>,
    } else {
    }
    %c0 = arith.constant 0 : index
    %c0_1 = arith.constant 0 : index
    %3 = vector.load %arg6[%c0, %c0_1] : memref<64x128xf32, #tpu.memory_space<vmem>>, vector<64x128xf32>
    %c0_2 = arith.constant 0 : index
    %c0_3 = arith.constant 0 : index
    %4 = vector.load %arg2[%c0_2, %c0_3] : memref<64x64xbf16, #tpu.memory_space<vmem>>, vector<64x64xbf16>
    %c0_4 = arith.constant 0 : index
    %c0_5 = arith.constant 0 : index
    %5 = vector.load %arg3[%c0_4, %c0_5] : memref<64x128xbf16, #tpu.memory_space<vmem>>, vector<64x128xbf16>
    %cst = arith.constant dense<0.000000e+00> : vector<64x128xf32>
    %6 = tpu.matmul %4, %5, %cst {dimension_numbers = #tpu.dot_dimension_numbers<[1], [0], [0], [1], [0, 0, 1, 1], [], []>} : vector<64x64xbf16>, vector<64x128xbf16>, vector<64x128xf32> -> vector<64x128xf32>
    %7 = arith.addf %3, %6 : vector<64x128xf32>
    %c0_6 = arith.constant 0 : index
    %c0_7 = arith.constant 0 : index
    %8 = vector.load %arg6[%c0_6, %c0_7] : memref<64x128xf32, #tpu.memory_space<vmem>>, vector<64x128xf32>
    tpu.vector_store %arg6[%c0_6, %c0_7], %7 {strides = array<i32>} : memref<64x128xf32, #tpu.memory_space<vmem>>, vector<64x128xf32>,
    %c0_i32_8 = arith.constant 0 : i32
    %9 = arith.cmpi eq, %arg1, %c0_i32_8 : i32
    %10 = arith.extui %9 : i1 to i32
    %c0_i32_9 = arith.constant 0 : i32
    %11 = arith.cmpi ne, %10, %c0_i32_9 : i32
    scf.if %11 {
      %c0_10 = arith.constant 0 : index
      %c0_11 = arith.constant 0 : index
      %12 = vector.load %arg6[%c0_10, %c0_11] : memref<64x128xf32, #tpu.memory_space<vmem>>, vector<64x128xf32>
      %13 = arith.truncf %12 : vector<64x128xf32> to vector<64x128xbf16>
      %c0_12 = arith.constant 0 : index
      %c0_13 = arith.constant 0 : index
      %14 = vector.load %arg5[%c0_12, %c0_13] : memref<64x128xbf16, #tpu.memory_space<vmem>>, vector<64x128xbf16>
      tpu.vector_store %arg5[%c0_12, %c0_13], %13 {strides = array<i32>} : memref<64x128xbf16, #tpu.memory_space<vmem>>, vector<64x128xbf16>,
    } else {
    }
    return
  }
  func.func @transform_0(%arg0: i32, %arg1: i32) -> (i32, i32) {
    %c0_i32 = arith.constant 0 : i32
    return %arg0, %arg1 : i32, i32
  }
  func.func @transform_1(%arg0: i32, %arg1: i32) -> (i32, i32) {
    %c0_i32 = arith.constant 0 : i32
    %c0_i32_0 = arith.constant 0 : i32
    return %arg1, %c0_i32 : i32, i32
  }
  func.func @transform_2(%arg0: i32, %arg1: i32) -> (i32, i32) {
    %c0_i32 = arith.constant 0 : i32
    %c0_i32_0 = arith.constant 0 : i32
    %c0_i32_1 = arith.constant 0 : i32
    return %c0_i32, %c0_i32_0 : i32, i32
  }
  func.func @transform_3(%arg0: i32, %arg1: i32) -> (i32, i32) {
    %c0_i32 = arith.constant 0 : i32
    %c0_i32_0 = arith.constant 0 : i32
    return %arg0, %c0_i32 : i32, i32
  }
}

module attributes {stable_mosaic.version = 11 : i64} {
  func.func @kernel(%arg0: i32, %arg1: i32, %arg2: memref<64x64xbf16, #tpu.memory_space<vmem>>, %arg3: memref<64x128xbf16, #tpu.memory_space<vmem>>, %arg4: memref<1x128xf32, #tpu.memory_space<vmem>>, %arg5: memref<64x128xf32, #tpu.memory_space<vmem>>, %arg6: memref<64x128xf32, #tpu.memory_space<vmem>>) attributes {dimension_semantics = [#tpu.dimension_semantics<parallel>, #tpu.dimension_semantics<arbitrary>], iteration_bounds = array<i64: 1, 1>, scalar_prefetch = 0 : i64, scratch_operands = 1 : i64, tpu.core_type = #tpu.core_type<tc>, window_params = [{transform_indices = @transform_0, window_bounds = array<i64: 64, 64>}, {transform_indices = @transform_1, window_bounds = array<i64: 64, 128>}, {pipeline_mode = #tpu.pipeline_mode<synchronous>, transform_indices = @transform_2, window_bounds = array<i64: 1, 128>}, {transform_indices = @transform_3, window_bounds = array<i64: 64, 128>}]} {
    %c0_i32 = arith.constant 0 : i32
    %0 = arith.cmpi eq, %arg1, %c0_i32 : i32
    %1 = arith.extui %0 : i1 to i32
    %c0_i32_0 = arith.constant 0 : i32
    %2 = arith.cmpi ne, %1, %c0_i32_0 : i32
    scf.if %2 {
      %cst_10 = arith.constant 0.000000e+00 : f32
      %12 = vector.broadcast %cst_10 : f32 to vector<64x128xf32>
      %c0_11 = arith.constant 0 : index
      %c0_12 = arith.constant 0 : index
      %13 = vector.load %arg6[%c0_11, %c0_12] : memref<64x128xf32, #tpu.memory_space<vmem>>, vector<64x128xf32>
      tpu.vector_store %arg6[%c0_11, %c0_12], %12 {strides = array<i32>} : memref<64x128xf32, #tpu.memory_space<vmem>>, vector<64x128xf32>,
    } else {
    }
    %c0 = arith.constant 0 : index
    %c0_1 = arith.constant 0 : index
    %3 = vector.load %arg6[%c0, %c0_1] : memref<64x128xf32, #tpu.memory_space<vmem>>, vector<64x128xf32>
    %c0_2 = arith.constant 0 : index
    %c0_3 = arith.constant 0 : index
    %4 = vector.load %arg2[%c0_2, %c0_3] : memref<64x64xbf16, #tpu.memory_space<vmem>>, vector<64x64xbf16>
    %c0_4 = arith.constant 0 : index
    %c0_5 = arith.constant 0 : index
    %5 = vector.load %arg3[%c0_4, %c0_5] : memref<64x128xbf16, #tpu.memory_space<vmem>>, vector<64x128xbf16>
    %cst = arith.constant dense<0.000000e+00> : vector<64x128xf32>
    %6 = tpu.matmul %4, %5, %cst {dimension_numbers = #tpu.dot_dimension_numbers<[1], [0], [0], [1], [0, 0, 1, 1], [], []>} : vector<64x64xbf16>, vector<64x128xbf16>, vector<64x128xf32> -> vector<64x128xf32>
    %7 = arith.addf %3, %6 : vector<64x128xf32>
    %c0_6 = arith.constant 0 : index
    %c0_7 = arith.constant 0 : index
    %8 = vector.load %arg6[%c0_6, %c0_7] : memref<64x128xf32, #tpu.memory_space<vmem>>, vector<64x128xf32>
    tpu.vector_store %arg6[%c0_6, %c0_7], %7 {strides = array<i32>} : memref<64x128xf32, #tpu.memory_space<vmem>>, vector<64x128xf32>,
    %c0_i32_8 = arith.constant 0 : i32
    %9 = arith.cmpi eq, %arg1, %c0_i32_8 : i32
    %10 = arith.extui %9 : i1 to i32
    %c0_i32_9 = arith.constant 0 : i32
    %11 = arith.cmpi ne, %10, %c0_i32_9 : i32
    scf.if %11 {
      %c0_10 = arith.constant 0 : index
      %c0_11 = arith.constant 0 : index
      %12 = vector.load %arg6[%c0_10, %c0_11] : memref<64x128xf32, #tpu.memory_space<vmem>>, vector<64x128xf32>
      %c0_12 = arith.constant 0 : index
      %c0_13 = arith.constant 0 : index
      %13 = vector.load %arg4[%c0_12, %c0_13] : memref<1x128xf32, #tpu.memory_space<vmem>>, vector<1x128xf32>
      %14 = vector.broadcast %13 : vector<1x128xf32> to vector<64x128xf32>
      %15 = arith.addf %12, %14 : vector<64x128xf32>
      %cst_14 = arith.constant 0.000000e+00 : f32
      %16 = vector.broadcast %cst_14 : f32 to vector<64x128xf32>
      %17 = arith.maximumf %15, %16 : vector<64x128xf32>
      %18 = tpu.iota {dimensions = array<i32: 1>} : vector<64x128xi32>
      %c8_i32 = arith.constant 8 : i32
      %19 = vector.broadcast %c8_i32 : i32 to vector<64x128xi32>
      %20 = arith.cmpi slt, %18, %19 : vector<64x128xi32>
      %cst_15 = arith.constant 0xFF800000 : f32
      %21 = vector.broadcast %cst_15 : f32 to vector<64x128xf32>
      %22 = arith.select %20, %17, %21 : vector<64x128xi1>, vector<64x128xf32>
      %cst_16 = arith.constant dense<0xFF800000> : vector<64xf32>
      %23 = vector.multi_reduction <maximumf>, %22, %cst_16 [1] : vector<64x128xf32> to vector<64xf32>
      %24 = vector.shape_cast %23 : vector<64xf32> to vector<64x1xf32>
      %25 = vector.broadcast %24 : vector<64x1xf32> to vector<64x128xf32>
      %26 = arith.subf %22, %25 : vector<64x128xf32>
      %27 = math.exp %26 : vector<64x128xf32>
      %cst_17 = arith.constant dense<0.000000e+00> : vector<64xf32>
      %28 = vector.multi_reduction <add>, %27, %cst_17 [1] : vector<64x128xf32> to vector<64xf32>
      %29 = vector.shape_cast %28 : vector<64xf32> to vector<64x1xf32>
      %30 = math.log %29 : vector<64x1xf32>
      %31 = vector.broadcast %30 : vector<64x1xf32> to vector<64x128xf32>
      %32 = arith.subf %26, %31 : vector<64x128xf32>
      %c0_18 = arith.constant 0 : index
      %c0_19 = arith.constant 0 : index
      %33 = vector.load %arg5[%c0_18, %c0_19] : memref<64x128xf32, #tpu.memory_space<vmem>>, vector<64x128xf32>
      tpu.vector_store %arg5[%c0_18, %c0_19], %32 {strides = array<i32>} : memref<64x128xf32, #tpu.memory_space<vmem>>, vector<64x128xf32>,
    } else {
    }
    return
  }
  func.func @transform_0(%arg0: i32, %arg1: i32) -> (i32, i32) {
    %c0_i32 = arith.constant 0 : i32
    return %arg0, %arg1 : i32, i32
  }
  func.func @transform_1(%arg0: i32, %arg1: i32) -> (i32, i32) {
    %c0_i32 = arith.constant 0 : i32
    %c0_i32_0 = arith.constant 0 : i32
    return %arg1, %c0_i32 : i32, i32
  }
  func.func @transform_2(%arg0: i32, %arg1: i32) -> (i32, i32) {
    %c0_i32 = arith.constant 0 : i32
    %c0_i32_0 = arith.constant 0 : i32
    %c0_i32_1 = arith.constant 0 : i32
    return %c0_i32, %c0_i32_0 : i32, i32
  }
  func.func @transform_3(%arg0: i32, %arg1: i32) -> (i32, i32) {
    %c0_i32 = arith.constant 0 : i32
    %c0_i32_0 = arith.constant 0 : i32
    return %arg0, %c0_i32 : i32, i32
  }
}

</mosaic_0001>

<bundles_post_ra>
// kernel: sgc_net_forward.5
= control target key start
LH: loop header
LB: loop body
LE: loop exit
PB: predicated region body
PF: predicated region fallthrough
CT: control target
= control target key end

     0   :  { %vm95_vm0 = vcmask 523264   ;;  %s395_s1 = inlined_call_operand.vmem [shape: bf16[64,128], index: 1, kind: input, shape index: {}]   ;;  %s396_s2 = inlined_call_operand.vmem [shape: f32[1,128], index: 2, kind: input, shape index: {}]   ;;  %s397_s0 = inlined_call_operand.vmem [shape: bf16[64,64], index: 0, kind: input, shape index: {}]   ;;  %s398_s3 = inlined_call_operand.vmem [shape: bf16[64,128], index: 3, kind: output, shape index: {}]  }
   0x1   :  { %v327_v0 = vld [vmem:[%s395_s1] sm:$0xff]   ;;  %v328_v1 = vld [vmem:[%s395_s1 + $0x8] sm:$0xff]   ;;  %v329_v2 = vld [vmem:[%s395_s1 + $0x10] sm:$0xff]  }
   0x2   :  { %303 = vmatprep.subr.bf16.mxu0 %v327_v0  ;;  %319 = vmatprep.subr.bf16.mxu1 %v327_v0  ;;  %v331_v3 = vld [vmem:[%s397_s0] sm:$0xff]   ;;  %v332_v4 = vld [vmem:[%s397_s0 + $0x10] sm:$0xff]   ;;  %v330_v5 = vld [vmem:[%s395_s1 + $0x18] sm:$0xff]  }
   0x3   :  { %304 = vmatpush3.bf16.msra.mxu0 %v327_v0  ;;  %323 = vmatpush3.bf16.msra.mxu1 %v327_v0  ;;  %v333_v6 = vld [vmem:[%s397_s0 + $0x8] sm:$0xff]   ;;  %v334_v7 = vld [vmem:[%s397_s0 + $0x18] sm:$0xff]  }
   0x4   :  { %305 = vmatprep.subr.bf16.mxu0 %v328_v1  ;;  %320 = vmatprep.subr.bf16.mxu1 %v328_v1 }
   0x5   :  { %311 = vmatprep.mubr.msk.bf16.mxu0 %vm95_vm0, %v331_v3  ;;  %315 = vmatprep.mubr.msk.bf16.mxu1 %vm95_vm0, %v332_v4 }
   0x7   :  { %306 = vmatpush3.bf16.msra.mxu0 %v328_v1  ;;  %324 = vmatpush3.bf16.msra.mxu1 %v328_v1 }
   0x8   :  { %307 = vmatprep.subr.bf16.mxu0 %v329_v2  ;;  %321 = vmatprep.subr.bf16.mxu1 %v329_v2 }
   0xb   :  { %308 = vmatpush3.bf16.msra.mxu0 %v329_v2  ;;  %325 = vmatpush3.bf16.msra.mxu1 %v329_v2 }
   0xc   :  { %309 = vmatprep.subr.bf16.mxu0 %v330_v5  ;;  %322 = vmatprep.subr.bf16.mxu1 %v330_v5 }
   0xf   :  { %310 = vmatpush3.bf16.msra.mxu0 %v330_v5  ;;  %326 = vmatpush3.bf16.msra.mxu1 %v330_v5 }
  0x12   :  { %312 = vmatmul.mubr.msk.bf16.vlgmr.msra.gmra.mrb[0].mxu0 %vm95_vm0, %v333_v6  ;;  %316 = vmatmul.mubr.msk.bf16.vlgmr.msra.gmra.mrb[0].mxu1 %vm95_vm0, %v334_v7 }
  0xe5   :  { %v313_v8 = vpop.f32.mrb[0].mxu0  ;;  %v317_v9 = vpop.f32.mrb[0].mxu1 }
  0xe6   :  { %v142_v10 = vpop.f32.mrb[1].mxu0  ;;  %v158_v11 = vpop.f32.mrb[1].mxu1 }
  0xe7   :  { %v314_v12 = vpop.f32.mrb[2].mxu0  ;;  %v318_v13 = vpop.f32.mrb[2].mxu1 }
  0xe8   :  { %v280_v14 = vpack.c.bf16 %v314_v12, %v313_v8  ;;  %v290_v15 = vpack.c.bf16 %v318_v13, %v317_v9  ;;  %v145_v16 = vpop.f32.mrb[3].mxu0  ;;  %v161_v17 = vpop.f32.mrb[3].mxu1 }
  0xe9   :  { %v275_v18 = vpack.c.bf16 %v145_v16, %v142_v10  ;;  %v285_v19 = vpack.c.bf16 %v161_v17, %v158_v11 }
  0xea   :  { %292 = vst [vmem:[%s398_s3 + $0x8] sm:$0xff] %v280_v14   ;;  %294 = vst [vmem:[%s398_s3 + $0x18] sm:$0xff] %v290_v15  }
  0xeb   :  { %276 = vst [vmem:[%s398_s3] sm:$0xff] %v275_v18   ;;  %293 = vst [vmem:[%s398_s3 + $0x10] sm:$0xff] %v285_v19  }

// kernel: sgc_net_forward.4
= control target key start
LH: loop header
LB: loop body
LE: loop exit
PB: predicated region body
PF: predicated region fallthrough
CT: control target
= control target key end

     0   :  { %vm56_vm0 = vcmask 261120   ;;  %s300_s1 = inlined_call_operand.vmem [shape: bf16[32,128], index: 1, kind: input, shape index: {}]   ;;  %s301_s0 = inlined_call_operand.vmem [shape: bf16[64,32], index: 0, kind: input, shape index: {}]   ;;  %s302_s2 = inlined_call_operand.vmem [shape: bf16[64,128], index: 2, kind: output, shape index: {}]  }
   0x1   :  { %v249_v0 = vld [vmem:[%s300_s1] sm:$0xff]   ;;  %v250_v1 = vld [vmem:[%s300_s1 + $0x8] sm:$0xff]   ;;  %v252_v3 = vld [vmem:[%s301_s0 + $0x10] sm:$0xff]  }
   0x2   :  { %233 = vmatprep.subr.bf16.mxu0 %v249_v0  ;;  %245 = vmatprep.subr.bf16.mxu1 %v249_v0  ;;  %v251_v2 = vld [vmem:[%s301_s0] sm:$0xff]   ;;  %v253_v4 = vld [vmem:[%s301_s0 + $0x8] sm:$0xff]   ;;  %v254_v5 = vld [vmem:[%s301_s0 + $0x18] sm:$0xff]  }
   0x3   :  { %234 = vmatpush3.bf16.msra.mxu0 %v249_v0  ;;  %247 = vmatpush3.bf16.msra.mxu1 %v249_v0 }
   0x4   :  { %235 = vmatprep.subr.bf16.mxu0 %v250_v1  ;;  %246 = vmatprep.subr.bf16.mxu1 %v250_v1 }
   0x5   :  { %237 = vmatprep.mubr.msk.bf16.mxu0 %vm56_vm0, %v251_v2  ;;  %241 = vmatprep.mubr.msk.bf16.mxu1 %vm56_vm0, %v252_v3 }
   0x7   :  { %236 = vmatpush3.bf16.msra.mxu0 %v250_v1  ;;  %248 = vmatpush3.bf16.msra.mxu1 %v250_v1 }
   0xa   :  { %238 = vmatmul.mubr.msk.bf16.vlgmr.msra.gmra.mrb[0].mxu0 %vm56_vm0, %v253_v4  ;;  %242 = vmatmul.mubr.msk.bf16.vlgmr.msra.gmra.mrb[0].mxu1 %vm56_vm0, %v254_v5 }
  0xdd   :  { %v239_v6 = vpop.f32.mrb[0].mxu0  ;;  %v243_v7 = vpop.f32.mrb[0].mxu1 }
  0xde   :  { %v103_v8 = vpop.f32.mrb[1].mxu0  ;;  %v119_v9 = vpop.f32.mrb[1].mxu1 }
  0xdf   :  { %v240_v10 = vpop.f32.mrb[2].mxu0  ;;  %v244_v11 = vpop.f32.mrb[2].mxu1 }
  0xe0   :  { %v212_v12 = vpack.c.bf16 %v240_v10, %v239_v6  ;;  %v222_v13 = vpack.c.bf16 %v244_v11, %v243_v7  ;;  %v106_v14 = vpop.f32.mrb[3].mxu0  ;;  %v122_v15 = vpop.f32.mrb[3].mxu1 }
  0xe1   :  { %v207_v16 = vpack.c.bf16 %v106_v14, %v103_v8  ;;  %v217_v17 = vpack.c.bf16 %v122_v15, %v119_v9 }
  0xe2   :  { %224 = vst [vmem:[%s302_s2 + $0x8] sm:$0xff] %v212_v12   ;;  %226 = vst [vmem:[%s302_s2 + $0x18] sm:$0xff] %v222_v13  }
  0xe3   :  { %208 = vst [vmem:[%s302_s2] sm:$0xff] %v207_v16   ;;  %225 = vst [vmem:[%s302_s2 + $0x10] sm:$0xff] %v217_v17  }

// kernel: sgc_net_forward.7
= control target key start
LH: loop header
LB: loop body
LE: loop exit
PB: predicated region body
PF: predicated region fallthrough
CT: control target
= control target key end

     0   :  { %vm95_vm0 = vcmask 523264   ;;  %v223_v8 = vlaneseq  ;;  %s526_s1 = inlined_call_operand.vmem [shape: bf16[64,128], index: 1, kind: input, shape index: {}]   ;;  %s527_s0 = inlined_call_operand.vmem [shape: bf16[64,64], index: 0, kind: input, shape index: {}]   ;;  %s528_s2 = inlined_call_operand.vmem [shape: f32[1,128], index: 2, kind: input, shape index: {}]   ;;  %s529_s3 = inlined_call_operand.vmem [shape: f32[64,128], index: 3, kind: output, shape index: {}]  }
   0x1   :  { %v371_v0 = vld [vmem:[%s526_s1] sm:$0xff]   ;;  %v372_v1 = vld [vmem:[%s526_s1 + $0x8] sm:$0xff]   ;;  %v373_v2 = vld [vmem:[%s526_s1 + $0x10] sm:$0xff]  }
   0x2   :  { %347 = vmatprep.subr.bf16.mxu0 %v371_v0  ;;  %363 = vmatprep.subr.bf16.mxu1 %v371_v0  ;;  %v375_v3 = vld [vmem:[%s527_s0] sm:$0xff]   ;;  %v377_v4 = vld [vmem:[%s527_s0 + $0x10] sm:$0xff]   ;;  %v374_v5 = vld [vmem:[%s526_s1 + $0x18] sm:$0xff]   ;;  %v224_v10 = vand.u32 127, %v223_v8 }
   0x3   :  { %348 = vmatpush3.bf16.msra.mxu0 %v371_v0  ;;  %367 = vmatpush3.bf16.msra.mxu1 %v371_v0  ;;  %v376_v6 = vld [vmem:[%s527_s0 + $0x8] sm:$0xff]   ;;  %v378_v7 = vld [vmem:[%s527_s0 + $0x18] sm:$0xff]   ;;  %v338_v9 = vld [vmem:[%s528_s2] ss:$0 sm:$0xff] }
   0x4   :  { %349 = vmatprep.subr.bf16.mxu0 %v372_v1  ;;  %364 = vmatprep.subr.bf16.mxu1 %v372_v1  ;;  %vm225_vm1 = vcmp.lt.s32.totalorder %v224_v10, 8 }
   0x5   :  { %355 = vmatprep.mubr.msk.bf16.mxu0 %vm95_vm0, %v375_v3  ;;  %359 = vmatprep.mubr.msk.bf16.mxu1 %vm95_vm0, %v377_v4 }
   0x7   :  { %350 = vmatpush3.bf16.msra.mxu0 %v372_v1  ;;  %368 = vmatpush3.bf16.msra.mxu1 %v372_v1 }
   0x8   :  { %351 = vmatprep.subr.bf16.mxu0 %v373_v2  ;;  %365 = vmatprep.subr.bf16.mxu1 %v373_v2 }
   0xb   :  { %352 = vmatpush3.bf16.msra.mxu0 %v373_v2  ;;  %369 = vmatpush3.bf16.msra.mxu1 %v373_v2 }
   0xc   :  { %353 = vmatprep.subr.bf16.mxu0 %v374_v5  ;;  %366 = vmatprep.subr.bf16.mxu1 %v374_v5 }
   0xf   :  { %354 = vmatpush3.bf16.msra.mxu0 %v374_v5  ;;  %370 = vmatpush3.bf16.msra.mxu1 %v374_v5 }
  0x12   :  { %356 = vmatmul.mubr.msk.bf16.vlgmr.msra.gmra.mrb[0].mxu0 %vm95_vm0, %v376_v6  ;;  %360 = vmatmul.mubr.msk.bf16.vlgmr.msra.gmra.mrb[0].mxu1 %vm95_vm0, %v378_v7 }
  0xe5   :  { %v357_v11 = vpop.f32.mrb[0].mxu0  ;;  %v361_v12 = vpop.f32.mrb[0].mxu1 }
  0xe6   :  { %v209_v13 = vadd.f32 %v357_v11, %v338_v9  ;;  %v142_v14 = vpop.f32.mrb[1].mxu0  ;;  %v158_v15 = vpop.f32.mrb[1].mxu1  ;;  %v213_v35 = vadd.f32 %v361_v12, %v338_v9 }
  0xe7   :  { %v207_v16 = vadd.f32 %v338_v9, %v142_v14  ;;  %v358_v17 = vpop.f32.mrb[2].mxu0  ;;  %v211_v18 = vadd.f32 %v338_v9, %v158_v15  ;;  %v362_v19 = vpop.f32.mrb[2].mxu1 }
  0xe8   :  { %v217_v20 = vmax.f32 %v209_v13, 0.0  ;;  %v210_v21 = vadd.f32 %v358_v17, %v338_v9  ;;  %v145_v22 = vpop.f32.mrb[3].mxu0  ;;  %v161_v23 = vpop.f32.mrb[3].mxu1  ;;  %v214_v32 = vadd.f32 %v362_v19, %v338_v9  ;;  %v221_v39 = vmax.f32 %v213_v35, 0.0 }
  0xe9   :  { %v215_v24 = vmax.f32 %v207_v16, 0.0  ;;  %v219_v25 = vmax.f32 %v211_v18, 0.0  ;;  %v212_v27 = vadd.f32 %v338_v9, %v161_v23  ;;  %v208_v29 = vadd.f32 %v338_v9, %v145_v22 }
  0xea   :  { %v218_v26 = vmax.f32 %v210_v21, 0.0  ;;  %v228_v28 = vsel %vm225_vm1, %v217_v20, -inf  ;;  %v222_v37 = vmax.f32 %v214_v32, 0.0  ;;  %v232_v42 = vsel %vm225_vm1, %v221_v39, -inf }
  0xeb   :  { %238 = vmax.xlane.f32.xlu1 %v228_v28  ;;  %v226_v30 = vsel %vm225_vm1, %v215_v24, -inf  ;;  %v230_v31 = vsel %vm225_vm1, %v219_v25, -inf  ;;  %v220_v33 = vmax.f32 %v212_v27, 0.0  ;;  %v216_v36 = vmax.f32 %v208_v29, 0.0 }
  0xec   :  { %234 = vmax.xlane.f32.xlu0 %v226_v30  ;;  %v229_v34 = vsel %vm225_vm1, %v218_v26, -inf  ;;  %v233_v41 = vsel %vm225_vm1, %v222_v37, -inf }
  0xed   :  { %v231_v38 = vsel %vm225_vm1, %v220_v33, -inf  ;;  %v227_v40 = vsel %vm225_vm1, %v216_v36, -inf }
  0xef   :  { %240 = vmax.xlane.f32.xlu1 %v229_v34 }
  0xf0   :  { %242 = vmax.xlane.f32.xlu0 %v230_v31 }
  0xf3   :  { %244 = vmax.xlane.f32.xlu1 %v231_v38 }
  0xf4   :  { %236 = vmax.xlane.f32.xlu0 %v227_v40 }
  0xf7   :  { %248 = vmax.xlane.f32.xlu1 %v233_v41 }
  0xf8   :  { %246 = vmax.xlane.f32.xlu0 %v232_v42 }
 0x178   :  { %v239_v43 = vpop.xlane.xlu1 %238 }
 0x179   :  { %v470_v44 = vsub.f32 %v228_v28, %v239_v43  ;;  %v235_v45 = vpop.xlane.xlu0 %234 }
 0x17a   :  { %v472_v46 = vsub.f32 %v226_v30, %v235_v45 }
 0x17b   :  { %v262_v47 = vmul.f32 1.442695, %v470_v44 }
 0x17c   :  { %v258_v48 = vmul.f32 1.442695, %v472_v46  ;;  %v241_v49 = vpop.xlane.xlu1 %240 }
 0x17d   :  { %379 = vpow2.f32 %v262_v47  ;;  %v476_v50 = vsub.f32 %v229_v34, %v241_v49  ;;  %v243_v51 = vpop.xlane.xlu0 %242 }
 0x17e   :  { %v478_v52 = vsub.f32 %v230_v31, %v243_v51  ;;  %381 = vpow2.f32 %v258_v48 }
 0x17f   :  { %v264_v53 = vmul.f32 1.442695, %v476_v50 }
 0x180   :  { %v245_v54 = vpop.xlane.xlu1 %244  ;;  %v266_v55 = vmul.f32 1.442695, %v478_v52 }
 0x181   :  { %383 = vpow2.f32 %v264_v53  ;;  %v482_v56 = vsub.f32 %v231_v38, %v245_v54  ;;  %v237_v57 = vpop.xlane.xlu0 %236 }
 0x182   :  { %v484_v58 = vsub.f32 %v227_v40, %v237_v57  ;;  %385 = vpow2.f32 %v266_v55 }
 0x183   :  { %v268_v61 = vmul.f32 1.442695, %v482_v56 }
 0x184   :  { %v260_v59 = vmul.f32 1.442695, %v484_v58  ;;  %v249_v60 = vpop.xlane.xlu1 %248 }
 0x185   :  { %v247_v62 = vpop.xlane.xlu0 %246  ;;  %v488_v63 = vsub.f32 %v233_v41, %v249_v60 }
 0x186   :  { %387 = vpow2.f32 %v260_v59  ;;  %v490_v0 = vsub.f32 %v232_v42, %v247_v62 }
 0x187   :  { %v380_v1 = vpop.eup %379  ;;  %389 = vpow2.f32 %v268_v61  ;;  %v272_v4 = vmul.f32 1.442695, %v488_v63 }
 0x188   :  { %v270_v2 = vmul.f32 1.442695, %v490_v0  ;;  %278 = vadd.xlane.f32.xlu0 %v380_v1  ;;  %v382_v3 = vpop.eup %381 }
 0x18a   :  { %391 = vpow2.f32 %v270_v2 }
 0x18b   :  { %v384_v5 = vpop.eup %383  ;;  %393 = vpow2.f32 %v272_v4 }
 0x18c   :  { %280 = vadd.xlane.f32.xlu1 %v384_v5  ;;  %274 = vadd.xlane.f32.xlu0 %v382_v3  ;;  %v386_v6 = vpop.eup %385 }
 0x190   :  { %v388_v7 = vpop.eup %387  ;;  %282 = vadd.xlane.f32.xlu0 %v386_v6 }
 0x191   :  { %276 = vadd.xlane.f32.xlu1 %v388_v7  ;;  %v390_v8 = vpop.eup %389 }
 0x194   :  { %v392_v9 = vpop.eup %391 }
 0x195   :  { %284 = vadd.xlane.f32.xlu1 %v390_v8  ;;  %286 = vadd.xlane.f32.xlu0 %v392_v9  ;;  %v394_v10 = vpop.eup %393 }
 0x199   :  { %288 = vadd.xlane.f32.xlu1 %v394_v10 }
 0x215   :  { %v279_v11 = vpop.xlane.xlu0 %278 }
 0x216   :  { %395 = vlog2.f32 %v279_v11 }
 0x219   :  { %v281_v12 = vpop.xlane.xlu1 %280  ;;  %v275_v13 = vpop.xlane.xlu0 %274 }
 0x21a   :  { %397 = vlog2.f32 %v281_v12 }
 0x21b   :  { %399 = vlog2.f32 %v275_v13 }
 0x21d   :  { %v283_v14 = vpop.xlane.xlu0 %282 }
 0x21e   :  { %401 = vlog2.f32 %v283_v14  ;;  %v277_v15 = vpop.xlane.xlu1 %276 }
 0x21f   :  { %403 = vlog2.f32 %v277_v15 }
 0x220   :  { %v396_v16 = vpop.eup %395 }
 0x221   :  { %v295_v17 = vmul.f32 0.6931472, %v396_v16 }
 0x222   :  { %v285_v18 = vpop.xlane.xlu1 %284  ;;  %v287_v19 = vpop.xlane.xlu0 %286 }
 0x223   :  { %v308_v20 = vsub.f32 %v470_v44, %v295_v17  ;;  %405 = vlog2.f32 %v285_v18 }
 0x224   :  { %v398_v21 = vpop.eup %397  ;;  %407 = vlog2.f32 %v287_v19 }
 0x225   :  { %v400_v22 = vpop.eup %399  ;;  %316 = vst [vmem:[%s529_s3 + $0x10] sm:$0xff] %v308_v20  ;;  %v297_v23 = vmul.f32 0.6931472, %v398_v21 }
 0x226   :  { %v291_v24 = vmul.f32 0.6931472, %v400_v22  ;;  %v289_v25 = vpop.xlane.xlu1 %288 }
 0x227   :  { %v309_v26 = vsub.f32 %v476_v50, %v297_v23  ;;  %409 = vlog2.f32 %v289_v25 }
 0x228   :  { %v402_v27 = vpop.eup %401  ;;  %v306_v28 = vsub.f32 %v472_v46, %v291_v24 }
 0x229   :  { %v404_v29 = vpop.eup %403  ;;  %317 = vst [vmem:[%s529_s3 + $0x18] sm:$0xff] %v309_v26  ;;  %v299_v30 = vmul.f32 0.6931472, %v402_v27 }
 0x22a   :  { %314 = vst [vmem:[%s529_s3] sm:$0xff] %v306_v28  ;;  %v293_v31 = vmul.f32 0.6931472, %v404_v29 }
 0x22b   :  { %v310_v32 = vsub.f32 %v478_v52, %v299_v30 }
 0x22c   :  { %v307_v33 = vsub.f32 %v484_v58, %v293_v31 }
 0x22d   :  { %v406_v34 = vpop.eup %405  ;;  %318 = vst [vmem:[%s529_s3 + $0x20] sm:$0xff] %v310_v32 }
 0x22e   :  { %v408_v35 = vpop.eup %407  ;;  %315 = vst [vmem:[%s529_s3 + $0x8] sm:$0xff] %v307_v33  ;;  %v301_v36 = vmul.f32 0.6931472, %v406_v34 }
 0x22f   :  { %v303_v37 = vmul.f32 0.6931472, %v408_v35 }
 0x230   :  { %v311_v38 = vsub.f32 %v482_v56, %v301_v36 }
 0x231   :  { %v410_v39 = vpop.eup %409  ;;  %v312_v40 = vsub.f32 %v490_v0, %v303_v37 }
 0x232   :  { %319 = vst [vmem:[%s529_s3 + $0x28] sm:$0xff] %v311_v38  ;;  %v305_v41 = vmul.f32 0.6931472, %v410_v39 }
 0x233   :  { %320 = vst [vmem:[%s529_s3 + $0x30] sm:$0xff] %v312_v40 }
 0x234   :  { %v313_v42 = vsub.f32 %v488_v63, %v305_v41 }
 0x236   :  { %321 = vst [vmem:[%s529_s3 + $0x38] sm:$0xff] %v313_v42 }

</bundles_post_ra>
